<compile_context>
chip_gen: v6e
topology: v6e:2x2x1
jax: 0.10.0
libtpu: 0.0.40
codegen_flags: <defaults>
</compile_context>

<pallas_src>
import jax
import jax.numpy as jnp
import numpy as np
from jax import lax
from jax.experimental import pallas as pl
from jax.experimental.pallas import tpu as pltpu

IMAGENET_MEAN = np.array([0.485, 0.456, 0.406], np.float32)
IMAGENET_STD = np.array([0.229, 0.224, 0.225], np.float32)


# -----------------------------------------------------------------------------
# Kernel helpers
# -----------------------------------------------------------------------------
def _gram_raw_bf16(f):
    """Raw (unscaled) gram f f^T with bf16 MXU inputs and f32 accumulation."""
    fb = f.astype(jnp.bfloat16)
    return lax.dot_general(fb, fb, (((1,), (1,)), ((), ())),
                           preferred_element_type=jnp.float32)


def _make_style_kernel(n_layers, active_layers):
    """Style path, run once with B=1: VGG chain + raw gram for active layers only."""
    active = tuple(active_layers)

    def kernel(*refs):
        x_ref = refs[0]
        w_refs = refs[1:1 + n_layers]
        g_refs = refs[1 + n_layers:1 + n_layers + len(active)]
        g_by_layer = dict(zip(active, g_refs))

        f = x_ref[0]                                  # (C0, N) raw style image, f32
        for l in range(n_layers):
            f = jnp.maximum(
                jnp.dot(w_refs[l][...], f.astype(jnp.bfloat16),
                        preferred_element_type=jnp.float32), 0.0)
            if l in g_by_layer:
                g_by_layer[l][...] = _gram_raw_bf16(f)

    return kernel


def _make_transfer_kernel(n_layers, c_block, active_layers, img_w, n_spatial,
                          out_rows):
    """Fused per-batch-element pass (one grid step = one batch element).

    imagenet norm -> TV (roll + mask) -> fused [input | content] VGG chain with
    per-layer raw-gram SSE against precomputed style grams (active layers only) ->
    content SSE at c_block.  Only a handful of scalars are written back, packed into
    one full (8, 128) tile so the batch grid axis can be 'parallel' (v7x megacore).
    """
    active = tuple(active_layers)
    n_active = len(active)

    def kernel(*refs):
        inp_ref, cont_ref, mean_ref, istd_ref = refs[0], refs[1], refs[2], refs[3]
        w_refs = refs[4:4 + n_layers]
        gt_refs = refs[4 + n_layers:4 + n_layers + n_active]
        out_ref = refs[4 + n_layers + n_active]
        gt_by_layer = dict(zip(active, gt_refs))

        n = n_spatial
        x = inp_ref[0]                                    # (C0, N) raw input image
        y = (x - mean_ref[...]) * istd_ref[...]           # normalised (mul by 1/std)

        # ---- total-variation on the normalised input (pltpu.roll + iota masks) ----
        # N = H*W row-major.  The iota is rolled with the SAME shift as y, and the
        # masks test |col - rolled_col| plus a same-row condition, so the result is
        # correct regardless of the roll direction convention.
        col = lax.broadcasted_iota(jnp.int32, y.shape, 1).astype(jnp.float32)

        y_r1 = pltpu.roll(y, n - 1, axis=1)               # distance-1 neighbour
        c_r1 = pltpu.roll(col, n - 1, axis=1)
        same_row = jnp.floor(col / img_w) == jnp.floor(c_r1 / img_w)
        mask_w = (jnp.abs(col - c_r1) == 1.0) & same_row
        w_var = jnp.sum(jnp.where(mask_w, jnp.abs(y - y_r1), 0.0))

        y_rw = pltpu.roll(y, n - img_w, axis=1)           # distance-W neighbour
        c_rw = pltpu.roll(col, n - img_w, axis=1)
        mask_h = jnp.abs(col - c_rw) == float(img_w)      # wrap pairs have diff N-W
        h_var = jnp.sum(jnp.where(mask_h, jnp.abs(y - y_rw), 0.0))
        tva = w_var + h_var

        # ---- fused VGG chain: [normalised input | raw content] along lanes --------
        f = jnp.concatenate([y, cont_ref[0]], axis=1)     # (C0, 2N)
        closs_sse = jnp.zeros((), jnp.float32)
        gram_sse = {}
        for l in range(n_layers):
            f = jnp.maximum(
                jnp.dot(w_refs[l][...], f.astype(jnp.bfloat16),
                        preferred_element_type=jnp.float32), 0.0)
            f_in = f[:, :n] if l <= c_block else f        # aligned slice (N % 128 == 0)
            if l == c_block:
                dc = f_in - f[:, n:]                      # content SSE in f32
                closs_sse = jnp.sum(dc * dc)
                f = f_in                                  # drop content half
            if l in gt_by_layer:
                d = _gram_raw_bf16(f_in) - gt_by_layer[l][...]
                gram_sse[l] = jnp.sum(d * d)

        # ---- pack per-batch scalars into one full (8,128) tile (unmasked store) ---
        parts = [closs_sse, tva] + [gram_sse[l] for l in active]
        rows = [jnp.broadcast_to(v, (1, 128)).astype(jnp.float32) for v in parts]
        pad = out_rows - len(parts)
        if pad > 0:
            rows.append(jnp.zeros((pad, 128), jnp.float32))
        out_ref[0] = jnp.concatenate(rows, axis=0)

    return kernel


# -----------------------------------------------------------------------------
# Wrappers
# -----------------------------------------------------------------------------
def style_gram_targets(style_flat, weights_bf16, active_layers):
    """Raw (unscaled) style gram targets for active layers, computed once (B=1)."""
    active = tuple(active_layers)
    if not active:
        return ()
    n_layers = max(active) + 1
    ws = list(weights_bf16[:n_layers])
    _, c0, n = style_flat.shape
    out_shape = tuple(jax.ShapeDtypeStruct((w.shape[0], w.shape[0]), jnp.float32)
                      for l, w in enumerate(ws) if l in active)
    in_specs = [pl.BlockSpec((1, c0, n), lambda i: (0, 0, 0))]
    in_specs += [pl.BlockSpec(w.shape, lambda i: (0, 0)) for w in ws]
    out_specs = tuple(pl.BlockSpec(s.shape, lambda i: (0, 0)) for s in out_shape)
    return pl.pallas_call(
        _make_style_kernel(n_layers, active),
        out_shape=out_shape,
        grid=(1,),
        in_specs=in_specs,
        out_specs=out_specs,
    )(style_flat, *ws)


def fused_transfer_partials(inp_flat, cont_flat, weights_bf16, target_grams,
                            active_layers, *, c_block, img_w):
    """Per-batch-element partial sums: (B, out_rows, 128) with scalars at lane 0."""
    b, c0, n = inp_flat.shape
    n_layers = len(weights_bf16)
    p = 2 + len(active_layers)
    out_rows = max(8, ((p + 7) // 8) * 8)
    mean = jnp.asarray(IMAGENET_MEAN, jnp.float32).reshape(c0, 1)
    inv_std = jnp.asarray(1.0 / IMAGENET_STD, jnp.float32).reshape(c0, 1)

    in_specs = [
        pl.BlockSpec((1, c0, n), lambda i: (i, 0, 0)),    # generated image
        pl.BlockSpec((1, c0, n), lambda i: (i, 0, 0)),    # content image
        pl.BlockSpec((c0, 1), lambda i: (0, 0)),          # imagenet mean
        pl.BlockSpec((c0, 1), lambda i: (0, 0)),          # imagenet 1/std
    ]
    in_specs += [pl.BlockSpec(w.shape, lambda i: (0, 0)) for w in weights_bf16]
    in_specs += [pl.BlockSpec(g.shape, lambda i: (0, 0)) for g in target_grams]

    return pl.pallas_call(
        _make_transfer_kernel(n_layers, c_block, active_layers, img_w, n, out_rows),
        out_shape=jax.ShapeDtypeStruct((b, out_rows, 128), jnp.float32),
        grid=(b,),
        in_specs=in_specs,
        out_specs=pl.BlockSpec((1, out_rows, 128), lambda i: (i, 0, 0)),
        compiler_params=pltpu.CompilerParams(
            dimension_semantics=("parallel",)),           # batch elems independent
    )(inp_flat, cont_flat, mean, inv_std, *weights_bf16, *target_grams)


def make_transfer_loss(vgg_weights, x_style, *, cont_wgt, style_wgt,
                       style_block_wgts, tva_wgt, c_block=1):
    """Build a jitted loss_fn(inp, x_cont) -> (3,).  Style targets + bf16 weights are
    prepared ONCE here (hoisted out of the per-step loss)."""
    num_layers = len(vgg_weights)
    assert 0 <= c_block < num_layers

    active = tuple(l for l, bw in enumerate(style_block_wgts)
                   if l < num_layers and (style_wgt * bw) > 0)
    last_needed = max((c_block,) + active)
    # Same bf16 weights for input/content/style chains (weight-quant error cancels
    # in the gram difference); cast once here, not per step.
    weights_bf16 = [jnp.asarray(w).astype(jnp.bfloat16)
                    for w in vgg_weights[:last_needed + 1]]
    out_channels = [int(w.shape[0]) for w in vgg_weights]

    _, c0, h_s, w_s = x_style.shape
    assert c0 == 3, "imagenet normalisation expects 3 channels"
    n_style = h_s * w_s
    style_flat = jnp.asarray(x_style, jnp.float32).reshape(1, c0, n_style)
    target_grams = style_gram_targets(style_flat, weights_bf16, active)

    def loss_fn(inp, x_cont):
        b, c0_, h, w = inp.shape
        assert c0_ == c0 and x_cont.shape == inp.shape
        assert h != 2, "TODO(synk): H==2 aliases the rolled H-neighbour TV mask"
        n = h * w
        inp_flat = inp.reshape(b, c0_, n)
        cont_flat = x_cont.reshape(b, c0_, n)

        # Bring the raw style grams into "raw input gram" units if spatial sizes
        # differ (constant-folded under jit; factor is 1.0 in the common case).
        scale_tgt = float(n) / float(n_style)
        gt_feed = tuple(g if scale_tgt == 1.0 else g * scale_tgt
                        for g in target_grams)

        parts = fused_transfer_partials(inp_flat, cont_flat, weights_bf16, gt_feed,
                                        active, c_block=c_block, img_w=w)
        scal = parts[:, :, 0]                     # (B, out_rows) per-batch partials
        closs_sse = jnp.sum(scal[:, 0])
        tva_sum = jnp.sum(scal[:, 1])

        c_cb = out_channels[c_block]
        closs = closs_sse / float(b * c_cb * n) * cont_wgt

        sloss = jnp.zeros((), jnp.float32)
        for idx, l in enumerate(active):
            c_l = out_channels[l]
            wgt = style_wgt * style_block_wgts[l]
            # gram = f f^T / (C*N); MSE over (B, C, C).  All scaling collapses into
            # this single scalar multiply.
            scale = 1.0 / (float(c_l * n) ** 2 * float(b * c_l * c_l))
            sloss = sloss + jnp.sum(scal[:, 2 + idx]) * (scale * wgt)

        tvaloss = tva_sum * tva_wgt
        return jnp.stack([closs, sloss, tvaloss])

    return jax.jit(loss_fn)


# -----------------------------------------------------------------------------
# Pure-JAX reference (mirrors the PyTorch code) for a sanity check
# -----------------------------------------------------------------------------
def _ref_vgg(x, weights):
    B, C, H, W = x.shape
    f = x.reshape(B, C, H * W)
    outs = []
    for w in weights:
        f = jnp.maximum(jnp.einsum("oc,bcn->bon", w, f,
                                   precision=lax.Precision.HIGHEST), 0.0)
        outs.append(f)
    return outs


def _ref_gram(f):
    b, c, n = f.shape
    return jnp.einsum("bcn,bdn->bcd", f, f,
                      precision=lax.Precision.HIGHEST) / (c * n)


def _ref_loss(inp, x_cont, x_style, weights, cont_wgt, style_wgt,
              style_block_wgts, tva_wgt, c_block):
    style_wgts = [style_wgt * b for b in style_block_wgts]
    bs = x_cont.shape[0]
    style_feat = _ref_vgg(jnp.tile(x_style, (bs, 1, 1, 1)), weights)
    cont_feat = _ref_vgg(x_cont, weights)[c_block]
    mean = jnp.asarray(IMAGENET_MEAN).reshape(1, 3, 1, 1)
    std = jnp.asarray(IMAGENET_STD).reshape(1, 3, 1, 1)
    y = (inp - mean) / std
    inp_feat = _ref_vgg(y, weights)
    closs = jnp.mean((inp_feat[c_block] - cont_feat) ** 2) * cont_wgt
    sloss = 0.0
    for fi, ft, wgt in zip(inp_feat, style_feat, style_wgts):
        if wgt > 0:
            sloss = sloss + jnp.mean((_ref_gram(fi) - _ref_gram(ft)) ** 2) * wgt
    tva = (jnp.sum(jnp.abs(y[:, :, :, :-1] - y[:, :, :, 1:]))
           + jnp.sum(jnp.abs(y[:, :, :-1, :] - y[:, :, 1:, :]))) * tva_wgt
    return jnp.stack([closs, sloss, tva])


# -----------------------------------------------------------------------------
if __name__ == "__main__":
    key = jax.random.PRNGKey(0)
    k1, k2, k3, k4, k5, k6 = jax.random.split(key, 6)

    # synthetic m_vgg: 3 blocks of 1x1 conv + relu, channels 3 -> 8 -> 16 -> 16
    vgg_weights = [
        0.5 * jax.random.normal(k1, (8, 3), jnp.float32),
        0.3 * jax.random.normal(k2, (16, 8), jnp.float32),
        0.3 * jax.random.normal(k3, (16, 16), jnp.float32),
    ]

    inp = jax.random.uniform(k4, (2, 3, 16, 16), jnp.float32)      # generated image
    x_cont = jax.random.uniform(k5, (2, 3, 16, 16), jnp.float32)   # content batch
    x_style = jax.random.uniform(k6, (1, 3, 16, 16), jnp.float32)  # single style image

    cfg = dict(cont_wgt=1.0, style_wgt=10.0,
               style_block_wgts=[0.25, 0.5, 1.0], tva_wgt=1e-3, c_block=1)

    # Style targets + bf16 weights prepared once; per-step loss is one fused kernel.
    loss_fn = make_transfer_loss(vgg_weights, x_style, **cfg)

    out = jax.block_until_ready(loss_fn(inp, x_cont))
    out = jax.block_until_ready(loss_fn(inp, x_cont))   # steady-state call, no style relaunch

    ref = _ref_loss(inp, x_cont, x_style, vgg_weights,
                    cfg["cont_wgt"], cfg["style_wgt"],
                    cfg["style_block_wgts"], cfg["tva_wgt"], cfg["c_block"])
    # rtol covers bf16 MXU inputs (f32 accumulation) vs the f32 HIGHEST reference.
    np.testing.assert_allclose(np.asarray(out), np.asarray(ref),
                               rtol=6e-2, atol=1e-5)

    print("KERNEL_OK")
</pallas_src>

<mosaic_0001>
module attributes {stable_mosaic.version = 11 : i64} {
  func.func @kernel(%arg0: i32, %arg1: memref<1x3x256xf32, #tpu.memory_space<vmem>>, %arg2: memref<8x3xbf16, #tpu.memory_space<vmem>>, %arg3: memref<16x8xbf16, #tpu.memory_space<vmem>>, %arg4: memref<16x16xbf16, #tpu.memory_space<vmem>>, %arg5: memref<8x8xf32, #tpu.memory_space<vmem>>, %arg6: memref<16x16xf32, #tpu.memory_space<vmem>>, %arg7: memref<16x16xf32, #tpu.memory_space<vmem>>) attributes {dimension_semantics = [#tpu.dimension_semantics<arbitrary>], iteration_bounds = array<i64: 1>, scalar_prefetch = 0 : i64, scratch_operands = 0 : i64, tpu.core_type = #tpu.core_type<tc>, window_params = [{pipeline_mode = #tpu.pipeline_mode<synchronous>, transform_indices = @transform_0, window_bounds = array<i64: 1, 3, 256>}, {pipeline_mode = #tpu.pipeline_mode<synchronous>, transform_indices = @transform_1, window_bounds = array<i64: 8, 3>}, {pipeline_mode = #tpu.pipeline_mode<synchronous>, transform_indices = @transform_2, window_bounds = array<i64: 16, 8>}, {pipeline_mode = #tpu.pipeline_mode<synchronous>, transform_indices = @transform_3, window_bounds = array<i64: 16, 16>}, {pipeline_mode = #tpu.pipeline_mode<synchronous>, transform_indices = @transform_4, window_bounds = array<i64: 8, 8>}, {pipeline_mode = #tpu.pipeline_mode<synchronous>, transform_indices = @transform_5, window_bounds = array<i64: 16, 16>}, {pipeline_mode = #tpu.pipeline_mode<synchronous>, transform_indices = @transform_6, window_bounds = array<i64: 16, 16>}]} {
    %c0 = arith.constant 0 : index
    %c0_0 = arith.constant 0 : index
    %c0_1 = arith.constant 0 : index
    %0 = vector.load %arg1[%c0, %c0_0, %c0_1] : memref<1x3x256xf32, #tpu.memory_space<vmem>>, vector<1x3x256xf32>
    %1 = vector.shape_cast %0 : vector<1x3x256xf32> to vector<3x256xf32>
    %c0_2 = arith.constant 0 : index
    %c0_3 = arith.constant 0 : index
    %2 = vector.load %arg2[%c0_2, %c0_3] : memref<8x3xbf16, #tpu.memory_space<vmem>>, vector<8x3xbf16>
    %3 = arith.truncf %1 : vector<3x256xf32> to vector<3x256xbf16>
    %cst = arith.constant dense<0.000000e+00> : vector<8x256xf32>
    %4 = tpu.matmul %2, %3, %cst {dimension_numbers = #tpu.dot_dimension_numbers<[1], [0], [0], [1], [0, 0, 1, 1], [], []>} : vector<8x3xbf16>, vector<3x256xbf16>, vector<8x256xf32> -> vector<8x256xf32>
    %cst_4 = arith.constant 0.000000e+00 : f32
    %5 = vector.broadcast %cst_4 : f32 to vector<8x256xf32>
    %6 = arith.maximumf %4, %5 : vector<8x256xf32>
    %7 = arith.truncf %6 : vector<8x256xf32> to vector<8x256xbf16>
    %cst_5 = arith.constant dense<0.000000e+00> : vector<8x8xf32>
    %8 = tpu.matmul %7, %7, %cst_5 {dimension_numbers = #tpu.dot_dimension_numbers<[1], [1], [0], [0], [0, 0, 1, 0], [], []>} : vector<8x256xbf16>, vector<8x256xbf16>, vector<8x8xf32> -> vector<8x8xf32>
    %c0_6 = arith.constant 0 : index
    %c0_7 = arith.constant 0 : index
    %9 = vector.load %arg5[%c0_6, %c0_7] : memref<8x8xf32, #tpu.memory_space<vmem>>, vector<8x8xf32>
    tpu.vector_store %arg5[%c0_6, %c0_7], %8 {strides = array<i32>} : memref<8x8xf32, #tpu.memory_space<vmem>>, vector<8x8xf32>,
    %c0_8 = arith.constant 0 : index
    %c0_9 = arith.constant 0 : index
    %10 = vector.load %arg3[%c0_8, %c0_9] : memref<16x8xbf16, #tpu.memory_space<vmem>>, vector<16x8xbf16>
    %11 = arith.truncf %6 : vector<8x256xf32> to vector<8x256xbf16>
    %cst_10 = arith.constant dense<0.000000e+00> : vector<16x256xf32>
    %12 = tpu.matmul %10, %11, %cst_10 {dimension_numbers = #tpu.dot_dimension_numbers<[1], [0], [0], [1], [0, 0, 1, 1], [], []>} : vector<16x8xbf16>, vector<8x256xbf16>, vector<16x256xf32> -> vector<16x256xf32>
    %cst_11 = arith.constant 0.000000e+00 : f32
    %13 = vector.broadcast %cst_11 : f32 to vector<16x256xf32>
    %14 = arith.maximumf %12, %13 : vector<16x256xf32>
    %15 = arith.truncf %14 : vector<16x256xf32> to vector<16x256xbf16>
    %cst_12 = arith.constant dense<0.000000e+00> : vector<16x16xf32>
    %16 = tpu.matmul %15, %15, %cst_12 {dimension_numbers = #tpu.dot_dimension_numbers<[1], [1], [0], [0], [0, 0, 1, 0], [], []>} : vector<16x256xbf16>, vector<16x256xbf16>, vector<16x16xf32> -> vector<16x16xf32>
    %c0_13 = arith.constant 0 : index
    %c0_14 = arith.constant 0 : index
    %17 = vector.load %arg6[%c0_13, %c0_14] : memref<16x16xf32, #tpu.memory_space<vmem>>, vector<16x16xf32>
    tpu.vector_store %arg6[%c0_13, %c0_14], %16 {strides = array<i32>} : memref<16x16xf32, #tpu.memory_space<vmem>>, vector<16x16xf32>,
    %c0_15 = arith.constant 0 : index
    %c0_16 = arith.constant 0 : index
    %18 = vector.load %arg4[%c0_15, %c0_16] : memref<16x16xbf16, #tpu.memory_space<vmem>>, vector<16x16xbf16>
    %19 = arith.truncf %14 : vector<16x256xf32> to vector<16x256xbf16>
    %cst_17 = arith.constant dense<0.000000e+00> : vector<16x256xf32>
    %20 = tpu.matmul %18, %19, %cst_17 {dimension_numbers = #tpu.dot_dimension_numbers<[1], [0], [0], [1], [0, 0, 1, 1], [], []>} : vector<16x16xbf16>, vector<16x256xbf16>, vector<16x256xf32> -> vector<16x256xf32>
    %cst_18 = arith.constant 0.000000e+00 : f32
    %21 = vector.broadcast %cst_18 : f32 to vector<16x256xf32>
    %22 = arith.maximumf %20, %21 : vector<16x256xf32>
    %23 = arith.truncf %22 : vector<16x256xf32> to vector<16x256xbf16>
    %cst_19 = arith.constant dense<0.000000e+00> : vector<16x16xf32>
    %24 = tpu.matmul %23, %23, %cst_19 {dimension_numbers = #tpu.dot_dimension_numbers<[1], [1], [0], [0], [0, 0, 1, 0], [], []>} : vector<16x256xbf16>, vector<16x256xbf16>, vector<16x16xf32> -> vector<16x16xf32>
    %c0_20 = arith.constant 0 : index
    %c0_21 = arith.constant 0 : index
    %25 = vector.load %arg7[%c0_20, %c0_21] : memref<16x16xf32, #tpu.memory_space<vmem>>, vector<16x16xf32>
    tpu.vector_store %arg7[%c0_20, %c0_21], %24 {strides = array<i32>} : memref<16x16xf32, #tpu.memory_space<vmem>>, vector<16x16xf32>,
    return
  }
  func.func @transform_0(%arg0: i32) -> (i32, i32, i32) {
    %c0_i32 = arith.constant 0 : i32
    %c0_i32_0 = arith.constant 0 : i32
    %c0_i32_1 = arith.constant 0 : i32
    %c0_i32_2 = arith.constant 0 : i32
    return %c0_i32, %c0_i32_0, %c0_i32_1 : i32, i32, i32
  }
  func.func @transform_1(%arg0: i32) -> (i32, i32) {
    %c0_i32 = arith.constant 0 : i32
    %c0_i32_0 = arith.constant 0 : i32
    %c0_i32_1 = arith.constant 0 : i32
    return %c0_i32, %c0_i32_0 : i32, i32
  }
  func.func @transform_2(%arg0: i32) -> (i32, i32) {
    %c0_i32 = arith.constant 0 : i32
    %c0_i32_0 = arith.constant 0 : i32
    %c0_i32_1 = arith.constant 0 : i32
    return %c0_i32, %c0_i32_0 : i32, i32
  }
  func.func @transform_3(%arg0: i32) -> (i32, i32) {
    %c0_i32 = arith.constant 0 : i32
    %c0_i32_0 = arith.constant 0 : i32
    %c0_i32_1 = arith.constant 0 : i32
    return %c0_i32, %c0_i32_0 : i32, i32
  }
  func.func @transform_4(%arg0: i32) -> (i32, i32) {
    %c0_i32 = arith.constant 0 : i32
    %c0_i32_0 = arith.constant 0 : i32
    %c0_i32_1 = arith.constant 0 : i32
    return %c0_i32, %c0_i32_0 : i32, i32
  }
  func.func @transform_5(%arg0: i32) -> (i32, i32) {
    %c0_i32 = arith.constant 0 : i32
    %c0_i32_0 = arith.constant 0 : i32
    %c0_i32_1 = arith.constant 0 : i32
    return %c0_i32, %c0_i32_0 : i32, i32
  }
  func.func @transform_6(%arg0: i32) -> (i32, i32) {
    %c0_i32 = arith.constant 0 : i32
    %c0_i32_0 = arith.constant 0 : i32
    %c0_i32_1 = arith.constant 0 : i32
    return %c0_i32, %c0_i32_0 : i32, i32
  }
}

</mosaic_0001>

<bundles_post_ra>
// kernel: tpu_custom_call.1
= control target key start
LH: loop header
LB: loop body
LE: loop exit
PB: predicated region body
PF: predicated region fallthrough
CT: control target
= control target key end

     0   :  { %12 = vsyncpa [#allocation3], 0  ;;  %vm34_vm0 = vcmask 1040384   ;;  %vm35_vm1 = vcmask 1041408   ;;  %v468_v2 = vmov 65535   ;;  %v469_v5 = vmov 0   ;;  %s542_s0 = inlined_call_operand.vmem [shape: f32[1,3,256], index: 0, kind: input, shape index: {}]   ;;  %s543_s1 = inlined_call_operand.vmem [shape: bf16[8,3], index: 1, kind: input, shape index: {}]   ;;  %s544_s2 = inlined_call_operand.vmem [shape: bf16[16,8], index: 2, kind: input, shape index: {}]   ;;  %s545_s3 = inlined_call_operand.vmem [shape: bf16[16,16], index: 3, kind: input, shape index: {}]   ;;  %s546_s4 = inlined_call_operand.hbm [shape: f32[8,8], index: 4, kind: output, shape index: {0}]   ;;  %s547_s5 = inlined_call_operand.hbm [shape: f32[16,16], index: 5, kind: output, shape index: {1}]   ;;  %s548_s6 = inlined_call_operand.hbm [shape: f32[16,16], index: 6, kind: output, shape index: {2}]  }
   0x1   :  { %v23_v0 = vld [vmem:[%s542_s0] sm:$0x77]  ;;  %v36_v3 = vsel %vm34_vm0, 4294967295, %v468_v2  ;;  %76 = vmatprep.mubr.bf16.mxu0 %v469_v5 }
   0x2   :  { %v26_v1 = vcombine.high %v23_v0, %v23_v0  ;;  %v28_v4 = vpack.c.bf16 %v23_v0, %v23_v0  ;;  %v37_v6 = vsel %vm35_vm1, %v36_v3, 0 }
   0x4   :  { %v29_v7 = vpack.c.bf16 %v26_v1, %v26_v1 }
   0x5   :  { %13 = vsyncpa [#allocation5], 0  ;;  %v39_v8 = vand.u32 %v37_v6, %v28_v4  ;;  %v24_v10 = vld [vmem:[%s543_s1] sm:$0xf]  ;;  %vm30_vm2 = vcmask 23552   ;;  %vm141_vm3 = vcmask 1043456  }
   0x6   :  { %v42_v9 = vand.u32 %v37_v6, %v29_v7  ;;  %v402_v20 = vld [vmem:[%s544_s2] sm:$0xff]   ;;  %vm129_vm4 = vcmask 64512   ;;  %vm238_vm5 = vcmask 130048   ;;  %s471_s27 = smov [#allocation2]  }
   0x7   :  { %v403_v35 = vld [vmem:[%s545_s3] sm:$0xff]   ;;  %s470_s3 = smov [#allocation4]   ;;  %s349_s28 = sshll.u32 %s471_s27, 4  ;;  %s350_s28 = int_to_ptr.vmem [resolvable:$true] %s349_s28 }
   0x8   :  { %58 = vmatprep.subr.bf16.mxu0 %v42_v9  ;;  %s358_s26 = sshll.u32 %s470_s3, 4  ;;  %s359_s26 = int_to_ptr.vmem [resolvable:$true] %s358_s26 }
   0x9   :  { %59 = vmatpush1.bf16.msra.mxu0 %v39_v8  ;;  %s404_s29 = scalar_lea.vmem %s359_s26, 256  ;;  %p409_p1 = scmp.lt.s32.totalorder %s359_s26, %s359_s26 }
   0xa   :  { %p405_p0 = scmp.ne.s32.totalorder %s359_s26, %s404_s29  ;;  %p410_p2 = scmp.lt.s32.totalorder %s404_s29, %s404_s29 }
   0xc   :  { %388 = vmatmul.mubr.msk.bf16.vlgmr.msra.gmra.mxu0 %vm30_vm2, %v24_v10  ;;  %p411_p3 = por %p410_p2, %p409_p1 }
   0xd   :  { %180 = vmatprep.mubr.bf16.mxu0 %v469_v5 }
   0xe   :  { %p412_p4 = pnand %p411_p3, %p405_p0 }
  0xcc   :  { %v78_v11 = vpop.f32.mrf.mxu0 }
  0xcd   :  { %v85_v12 = vmax.f32 %v78_v11, 0.0 }
  0xce   :  { %v80_v13 = vpop.f32.mrf.mxu0 }
  0xcf   :  { %v86_v14 = vmax.f32 %v80_v13, 0.0  ;;  %v87_v15 = vpack.c.bf16 %v85_v12, %v85_v12 }
  0xd0   :  { %v82_v16 = vpop.f32.mrf.mxu0 }
  0xd1   :  { %v88_v17 = vpack.c.bf16 %v86_v14, %v86_v14  ;;  %v143_v19 = vsel %vm141_vm3, %v87_v15, 0 }
  0xd2   :  { %v83_v18 = vpop.f32.mrf.mxu0 }
  0xd3   :  { %103 = vmatprep.subr.bf16.mxu1 %v88_v17  ;;  %121 = vmatprep.mubr.bf16.mxu1 %v88_v17 }
  0xd4   :  { %390 = vmatprep.subr.msk.bf16.mxu0 %vm141_vm3, %v88_v17  ;;  %104 = vmatpush1.bf16.xpose.msra.mxu1 %v87_v15 }
  0xd5   :  { %163 = vmatpush1.bf16.msra.mxu0 %v143_v19 }
  0xd8   :  { %391 = vmatmul.mubr.msk.bf16.vlgmr.msra.gmra.mxu0 %vm129_vm4, %v402_v20 }
  0xd9   :  { %283 = vmatprep.mubr.bf16.mxu0 %v469_v5 }
  0xdb   :  { %122 = vmatmul.mubr.bf16.vlgmr.msra.gmra.mxu1 %v87_v15 }
 0x198   :  { %v182_v21 = vpop.f32.mrf.mxu0 }
 0x199   :  { %v191_v31 = vmax.f32 %v182_v21, 0.0 }
 0x19a   :  { %v184_v22 = vpop.f32.mrf.mxu0 }
 0x19b   :  { %v123_v23 = vpop.f32.mrf.mxu1  ;;  %v192_v28 = vmax.f32 %v184_v22, 0.0 }
 0x19c   :  { %130 = vst.msk [vmem:[#allocation2] sm:$0xff] %vm129_vm4, %v123_v23  ;;  %v186_v24 = vpop.f32.mrf.mxu0 }
 0x19d   :  { %v125_v25 = vpop.f32.mrf.mxu1  ;;  %v193_v26 = vmax.f32 %v186_v24, 0.0 }
 0x19e   :  { %v188_v27 = vpop.f32.mrf.mxu0 }
 0x19f   :  { %v194_v29 = vmax.f32 %v188_v27, 0.0  ;;  %v126_v30 = vpop.f32.mrf.mxu1  ;;  %v195_v34 = vpack.c.bf16 %v193_v26, %v191_v31 }
 0x1a1   :  { %v196_v32 = vpack.c.bf16 %v194_v29, %v192_v28  ;;  %v127_v33 = vpop.f32.mrf.mxu1 }
 0x1a3   :  { %211 = vmatprep.subr.bf16.mxu1 %v196_v32  ;;  %229 = vmatprep.mubr.bf16.mxu1 %v196_v32 }
 0x1a4   :  { %265 = vmatprep.subr.bf16.mxu0 %v196_v32  ;;  %212 = vmatpush1.bf16.xpose.msra.mxu1 %v195_v34 }
 0x1a5   :  { %266 = vmatpush1.bf16.msra.mxu0 %v195_v34 }
 0x1a8   :  { %393 = vmatmul.mubr.msk.bf16.vlgmr.msra.gmra.mxu0 %vm238_vm5, %v403_v35 }
 0x1ab   :  { %230 = vmatmul.mubr.bf16.vlgmr.msra.gmra.mxu1 %v195_v34 }
 0x268   :  { %v285_v36 = vpop.f32.mrf.mxu0 }
 0x269   :  { %v294_v46 = vmax.f32 %v285_v36, 0.0 }
 0x26a   :  { %v287_v37 = vpop.f32.mrf.mxu0 }
 0x26b   :  { %v231_v38 = vpop.f32.mrf.mxu1  ;;  %v295_v43 = vmax.f32 %v287_v37, 0.0 }
 0x26c   :  { %239 = vst.msk [vmem:[#allocation4] sm:$0xff] %vm238_vm5, %v231_v38  ;;  %v289_v39 = vpop.f32.mrf.mxu0 }
 0x26d   :  { %v233_v40 = vpop.f32.mrf.mxu1  ;;  %v296_v41 = vmax.f32 %v289_v39, 0.0 }
 0x26e   :  { %v291_v42 = vpop.f32.mrf.mxu0 }
 0x26f   :  { %v297_v44 = vmax.f32 %v291_v42, 0.0  ;;  %v234_v45 = vpop.f32.mrf.mxu1  ;;  %v298_v49 = vpack.c.bf16 %v296_v41, %v294_v46 }
 0x270   :  { %240 = vst.msk [vmem:[#allocation4 + $0x8] sm:$0xff] %vm238_vm5, %v234_v45 }
 0x271   :  { %v299_v47 = vpack.c.bf16 %v297_v44, %v295_v43  ;;  %v236_v48 = vpop.f32.mrf.mxu1 }
 0x273   :  { %314 = vmatprep.subr.bf16.mxu1 %v299_v47  ;;  %332 = vmatprep.mubr.bf16.mxu1 %v299_v47 }
 0x274   :  { %315 = vmatpush1.bf16.xpose.msra.mxu1 %v298_v49 }
 0x27b   :  { %333 = vmatmul.mubr.bf16.vlgmr.msra.gmra.mxu1 %v298_v49 }
 0x27c   :  { %415 = shalt.err (!%p412_p4)
}
 0x27d   :  { %s472_s30 = smov 128   ;;  %s473_s7 = smov 8  }
 0x27e   :  { %364 = dma.vmem_to_hbm [thread:$0]  %s359_s26, 256, %s547_s5, [#allocation5], %s472_s30, %s472_s30, %s473_s7  }
 0x27f   :  { %s424_s10 = scalar_lea.vmem %s350_s28, 128  ;;  %p429_p6 = scmp.lt.s32.totalorder %s350_s28, %s350_s28 }
 0x280   :  { %p425_p5 = scmp.ne.s32.totalorder %s350_s28, %s424_s10  ;;  %p430_p7 = scmp.lt.s32.totalorder %s424_s10, %s424_s10 }
 0x282   :  { %p431_p8 = por %p430_p7, %p429_p6 }
 0x284   :  { %p432_p9 = pnand %p431_p8, %p425_p5 }
 0x286   :  { %435 = shalt.err (!%p432_p9)
}
 0x287   :  { %352 = dma.vmem_to_hbm [thread:$0]  %s350_s28, 128, %s546_s4, [#allocation3]  }
 0x288   :  { %s474_s13 = smov [#allocation6]  }
 0x289   :  { %s370_s14 = sshll.u32 %s474_s13, 4  ;;  %s371_s14 = int_to_ptr.vmem [resolvable:$true] %s370_s14 }
 0x28a   :  { %s444_s5 = scalar_lea.vmem %s371_s14, 256  ;;  %p449_p11 = scmp.lt.s32.totalorder %s371_s14, %s371_s14 }
 0x28b   :  { %p445_p10 = scmp.ne.s32.totalorder %s371_s14, %s444_s5  ;;  %p450_p12 = scmp.lt.s32.totalorder %s444_s5, %s444_s5 }
 0x28d   :  { %p451_p13 = por %p450_p12, %p449_p11 }
 0x28f   :  { %p452_p0 = pnand %p451_p13, %p445_p10 }
 0x33b   :  { %v334_v50 = vpop.f32.mrf.mxu1 }
 0x33c   :  { %341 = vst.msk [vmem:[#allocation6] sm:$0xff] %vm238_vm5, %v334_v50 }
 0x33d   :  { %v336_v51 = vpop.f32.mrf.mxu1 }
 0x33f   :  { %v337_v52 = vpop.f32.mrf.mxu1 }
 0x340   :  { %342 = vst.msk [vmem:[#allocation6 + $0x8] sm:$0xff] %vm238_vm5, %v337_v52 }
 0x341   :  { %v339_v53 = vpop.f32.mrf.mxu1 }
 0x342   :  { %455 = shalt.err (!%p452_p0)
}
 0x343   :  { %376 = dma.vmem_to_hbm [thread:$0]  %s371_s14, 256, %s548_s6, [#allocation5], %s472_s30, %s472_s30, %s473_s7  }
 0x344   :  { %464 = dma.done.wait [#allocation3], 128  }
 0x345   :  { %465 = vsyncadd [#allocation3], 4294967168 }
 0x346   :  { %466 = dma.done.wait [#allocation5], 512  }
 0x347   :  { %467 = vsyncadd [#allocation5], 4294966784 }
 0x348   :  { %386 = vsyncpa [#allocation3], 1 }
 0x349   :  { %387 = vsyncpa [#allocation5], 1 }

</bundles_post_ra>
